<compile_context>
chip_gen: v5e
topology: v5e:2x2
jax: 0.10.0
libtpu: 0.0.40
codegen_flags: <defaults>
</compile_context>

<pallas_src>
import numpy as np
import jax
import jax.numpy as jnp
from jax import lax
from jax.experimental import pallas as pl
from jax.experimental.pallas import tpu as pltpu

# ---- model hyper-parameters (match the PyTorch __init__ defaults) ----------
VOCAB = 50
EMBED = 32
SEQ = 5
HEADS = 4
HEAD_DIM = EMBED // HEADS
HIDDEN = 64
BATCH = 2
BS = BATCH * SEQ          # fused batch*seq rows, ordered r = s*BATCH + b (s-major)
NEG_INF = -1e30
LANES = 128               # slab lane width


def _rup8(n):
    return ((n + 7) // 8) * 8


def _build_layout():
    """Static row offsets of every tensor inside the packed weight slab."""
    entries = [
        ("emb",   (VOCAB, EMBED)),
        ("pos",   (BS, EMBED)),            # positional rows repeated to BS rows
        ("wqkv",  (EMBED, 3 * EMBED)),
        ("bqkv",  (1, 3 * EMBED)),
        ("wo",    (EMBED, EMBED)),
        ("bo",    (1, EMBED)),
        ("w1",    (SEQ * EMBED, HIDDEN)),
        ("b1",    (1, HIDDEN)),
        ("w2",    (HIDDEN, VOCAB)),
        ("b2",    (1, VOCAB)),
        ("bias",  (BS, BS)),               # additive causal+same-batch mask
        ("hmask", (HEADS, EMBED)),         # per-head lane masks
    ]
    layout, off = {}, 0
    for name, (r, c) in entries:
        layout[name] = (off, r, c)
        off += _rup8(r)
    return layout, _rup8(off)


LAYOUT, SLAB_ROWS = _build_layout()


def _rd(slab_ref, name):
    """Static-slice read of one tensor from the packed slab (view -> load)."""
    off, r, c = LAYOUT[name]
    return slab_ref[off:off + r, 0:c]


# ----------------------------------------------------------------------------
# Kernel: one grid step = one (BATCH, SEQ) token batch, full forward pass.
# ----------------------------------------------------------------------------
def pvt_kernel(tok_ref, slab_ref, out_ref):
    """tok_ref : (BS, 1) int32 token column (s-major)      VMEM
       slab_ref: (SLAB_ROWS, 128) packed weights/constants  VMEM (resident)
       out_ref : (BATCH, VOCAB) logits                      VMEM
    """
    # --- one-hot MXU embedding gather + positional add -----------------------
    tok = tok_ref[...]                                           # (BS, 1) int32
    vocab_iota = lax.broadcasted_iota(jnp.int32, (BS, VOCAB), 1)
    onehot = (tok == vocab_iota).astype(jnp.float32)             # (BS, VOCAB)
    x = jnp.dot(onehot, _rd(slab_ref, "emb"),
                preferred_element_type=jnp.float32) + _rd(slab_ref, "pos")

    # --- fused Q/K/V projection (single MXU push) ----------------------------
    qkv = jnp.dot(x, _rd(slab_ref, "wqkv"),
                  preferred_element_type=jnp.float32) + _rd(slab_ref, "bqkv")
    q = qkv[:, 0 * EMBED:1 * EMBED]
    k = qkv[:, 1 * EMBED:2 * EMBED]
    v = qkv[:, 2 * EMBED:3 * EMBED]

    # --- multi-head attention with precomputed additive mask + lane masks ----
    bias = _rd(slab_ref, "bias")                                 # (BS, BS) 0 / -1e30
    hmask = _rd(slab_ref, "hmask")                               # (HEADS, EMBED)
    scale = 1.0 / float(np.sqrt(HEAD_DIM))

    attn = jnp.zeros((BS, EMBED), jnp.float32)
    for h in range(HEADS):                                       # static, 4 iters
        mh = hmask[h:h + 1, :]                                   # (1, E)
        s_h = lax.dot_general(q * mh, k, (((1,), (1,)), ((), ())),
                              preferred_element_type=jnp.float32) * scale + bias
        m = jnp.max(s_h, axis=-1, keepdims=True)
        p = jnp.exp(s_h - m)
        d = jnp.sum(p, axis=-1, keepdims=True)
        p = p * pl.reciprocal(d, approx=True)                    # EUP slot
        attn = attn + jnp.dot(p, v * mh, preferred_element_type=jnp.float32)
    attn = jnp.dot(attn, _rd(slab_ref, "wo"),
                   preferred_element_type=jnp.float32) + _rd(slab_ref, "bo")

    # --- MLP head: sum_s decomposition (no lane-concat flatten, K<=128) ------
    w1_off, _, _ = LAYOUT["w1"]
    h1 = jnp.zeros((BATCH, HIDDEN), jnp.float32)
    for s in range(SEQ):                                         # static, 5 iters
        a_s = attn[s * BATCH:(s + 1) * BATCH, :]                 # (B, E)
        w1_s = slab_ref[w1_off + s * EMBED: w1_off + (s + 1) * EMBED, 0:HIDDEN]
        h1 = h1 + jnp.dot(a_s, w1_s, preferred_element_type=jnp.float32)
    h1 = jnp.maximum(h1 + _rd(slab_ref, "b1"), 0.0)              # ReLU
    logits = jnp.dot(h1, _rd(slab_ref, "w2"),
                     preferred_element_type=jnp.float32) + _rd(slab_ref, "b2")

    out_ref[...] = logits                                        # single store


# ----------------------------------------------------------------------------
# Packing & wrapper
# ----------------------------------------------------------------------------
def pack_params(params):
    """Pack every weight/bias/constant into one (SLAB_ROWS, 128) f32 slab."""
    pos = np.asarray(params["pos"]).reshape(SEQ, EMBED)
    pos_bs = np.repeat(pos, BATCH, axis=0)                       # s-major (BS, E)

    # additive causal + same-batch mask over fused (BS, BS) scores
    r = np.arange(BS)[:, None]
    c = np.arange(BS)[None, :]
    allow = (r % BATCH == c % BATCH) & (c // BATCH <= r // BATCH)
    bias = np.where(allow, 0.0, NEG_INF).astype(np.float32)

    hmask = np.zeros((HEADS, EMBED), np.float32)
    for h in range(HEADS):
        hmask[h, h * HEAD_DIM:(h + 1) * HEAD_DIM] = 1.0

    tensors = {
        "emb":  np.asarray(params["embedding"]),
        "pos":  pos_bs,
        "wqkv": np.concatenate([np.asarray(params["wq"]),
                                np.asarray(params["wk"]),
                                np.asarray(params["wv"])], axis=1),
        "bqkv": np.concatenate([np.asarray(params["bq"]),
                                np.asarray(params["bk"]),
                                np.asarray(params["bv"])], axis=1),
        "wo":   np.asarray(params["wo"]), "bo": np.asarray(params["bo"]),
        "w1":   np.asarray(params["w1"]), "b1": np.asarray(params["b1"]),
        "w2":   np.asarray(params["w2"]), "b2": np.asarray(params["b2"]),
        "bias": bias, "hmask": hmask,
    }

    slab = np.zeros((SLAB_ROWS, LANES), np.float32)
    for name, (off, rr, cc) in LAYOUT.items():
        t = tensors[name].astype(np.float32)
        assert t.shape == (rr, cc), (name, t.shape, (rr, cc))
        slab[off:off + rr, 0:cc] = t
    return jnp.asarray(slab)


def _cost_estimate(n_batches):
    per = (2 * BS * VOCAB * EMBED                                # one-hot gather
           + 2 * BS * EMBED * 3 * EMBED                          # fused QKV
           + HEADS * (2 * BS * BS * EMBED + 2 * BS * BS * EMBED) # scores + P@V
           + 2 * BS * EMBED * EMBED                              # output projection
           + 2 * BATCH * SEQ * EMBED * HIDDEN                    # MLP layer 1
           + 2 * BATCH * HIDDEN * VOCAB)                         # MLP layer 2
    trans = HEADS * BS * BS + HEADS * BS                         # exp + reciprocal
    bytes_per = 4 * (BS + BATCH * VOCAB)
    return pl.CostEstimate(flops=n_batches * per,
                           transcendentals=n_batches * trans,
                           bytes_accessed=4 * SLAB_ROWS * LANES + n_batches * bytes_per)


@jax.jit
def pvt_forward(tokens_batched, slab):
    """tokens_batched: (N, B, S) int32; slab: output of pack_params.

    One pallas_call, grid=(N,): launch + weight-DMA cost amortized over N
    batches; the slab stays VMEM-resident across grid steps.
    """
    n = tokens_batched.shape[0]
    # s-major token columns: row r = s*BATCH + b
    tok_cols = tokens_batched.transpose(0, 2, 1).reshape(n, BS, 1).astype(jnp.int32)
    return pl.pallas_call(
        pvt_kernel,
        out_shape=jax.ShapeDtypeStruct((n, BATCH, VOCAB), jnp.float32),
        grid=(n,),
        in_specs=[
            pl.BlockSpec((None, BS, 1), lambda i: (i, 0, 0)),          # per-step tokens
            pl.BlockSpec((SLAB_ROWS, LANES), lambda i: (0, 0)),        # resident weights
        ],
        out_specs=pl.BlockSpec((None, BATCH, VOCAB), lambda i: (i, 0, 0)),
        compiler_params=pltpu.CompilerParams(dimension_semantics=("parallel",)),
        cost_estimate=_cost_estimate(4),
    )(tok_cols, slab)


# ----------------------------------------------------------------------------
# Pure-JAX reference (for correctness) and parameter construction
# ----------------------------------------------------------------------------
def pvt_reference(tokens, params):
    x = jnp.take(params["embedding"], tokens, axis=0) + params["pos"]    # (B,S,E)
    q = x @ params["wq"] + params["bq"]
    k = x @ params["wk"] + params["bk"]
    v = x @ params["wv"] + params["bv"]

    def split(t):  # (B,S,E) -> (B,H,S,Dh)
        return t.reshape(BATCH, SEQ, HEADS, HEAD_DIM).transpose(0, 2, 1, 3)

    qh, kh, vh = split(q), split(k), split(v)
    s = jnp.einsum("bhqd,bhkd->bhqk", qh, kh) / np.sqrt(HEAD_DIM)
    mask = np.tril(np.ones((SEQ, SEQ), dtype=bool))
    s = jnp.where(mask[None, None], s, NEG_INF)
    p = jax.nn.softmax(s, axis=-1)
    o = jnp.einsum("bhqk,bhkd->bhqd", p, vh)
    o = o.transpose(0, 2, 1, 3).reshape(BATCH, SEQ, EMBED)
    o = o @ params["wo"] + params["bo"]
    flat = o.reshape(BATCH, SEQ * EMBED)
    h1 = jax.nn.relu(flat @ params["w1"] + params["b1"])
    return h1 @ params["w2"] + params["b2"]


def make_params(key):
    ks = jax.random.split(key, 10)
    scale = 0.05
    return {
        "embedding": scale * jax.random.normal(ks[0], (VOCAB, EMBED), jnp.float32),
        "pos":       scale * jax.random.normal(ks[1], (1, SEQ, EMBED), jnp.float32),
        "wq": scale * jax.random.normal(ks[2], (EMBED, EMBED), jnp.float32),
        "bq": jnp.zeros((1, EMBED), jnp.float32),
        "wk": scale * jax.random.normal(ks[3], (EMBED, EMBED), jnp.float32),
        "bk": jnp.zeros((1, EMBED), jnp.float32),
        "wv": scale * jax.random.normal(ks[4], (EMBED, EMBED), jnp.float32),
        "bv": jnp.zeros((1, EMBED), jnp.float32),
        "wo": scale * jax.random.normal(ks[5], (EMBED, EMBED), jnp.float32),
        "bo": jnp.zeros((1, EMBED), jnp.float32),
        "w1": scale * jax.random.normal(ks[6], (SEQ * EMBED, HIDDEN), jnp.float32),
        "b1": scale * jax.random.normal(ks[7], (1, HIDDEN), jnp.float32),
        "w2": scale * jax.random.normal(ks[8], (HIDDEN, VOCAB), jnp.float32),
        "b2": scale * jax.random.normal(ks[9], (1, VOCAB), jnp.float32),
    }


if __name__ == "__main__":
    key = jax.random.PRNGKey(0)
    pkey, tkey = jax.random.split(key)
    params = make_params(pkey)

    N = 4  # several independent (BATCH, SEQ) token batches in one pallas_call
    tokens = jax.random.randint(tkey, (N, BATCH, SEQ), 0, VOCAB, dtype=jnp.int32)

    slab = jax.block_until_ready(pack_params(params))
    out = jax.block_until_ready(pvt_forward(tokens, slab))
    assert out.shape == (N, BATCH, VOCAB), out.shape

    ref = jnp.stack([pvt_reference(tokens[i], params) for i in range(N)])
    # tolerance relaxed slightly: pl.reciprocal(approx=True) in the softmax
    # denominator means exact parity with torch softmax is not expected.
    np.testing.assert_allclose(np.asarray(out), np.asarray(ref), rtol=2e-3, atol=2e-3)
    print("KERNEL_OK")
</pallas_src>

<mosaic_0001>
module attributes {stable_mosaic.version = 11 : i64} {
  func.func @pvt_kernel(%arg0: i32, %arg1: memref<1x10x1xi32, #tpu.memory_space<vmem>>, %arg2: memref<416x128xf32, #tpu.memory_space<vmem>>, %arg3: memref<1x2x50xf32, #tpu.memory_space<vmem>>) attributes {dimension_semantics = [#tpu.dimension_semantics<parallel>], iteration_bounds = array<i64: 4>, scalar_prefetch = 0 : i64, scratch_operands = 0 : i64, tpu.core_type = #tpu.core_type<tc>, window_params = [{transform_indices = @transform_0, window_bounds = array<i64: 1, 10, 1>}, {pipeline_mode = #tpu.pipeline_mode<synchronous>, transform_indices = @transform_1, window_bounds = array<i64: 416, 128>}, {transform_indices = @transform_2, window_bounds = array<i64: 1, 2, 50>}]} {
    %c0 = arith.constant 0 : index
    %c0_0 = arith.constant 0 : index
    %c0_1 = arith.constant 0 : index
    %0 = vector.load %arg1[%c0, %c0_0, %c0_1] : memref<1x10x1xi32, #tpu.memory_space<vmem>>, vector<1x10x1xi32>
    %1 = vector.shape_cast %0 : vector<1x10x1xi32> to vector<10x1xi32>
    %2 = tpu.iota {dimensions = array<i32: 1>} : vector<10x50xi32>
    %3 = vector.broadcast %1 : vector<10x1xi32> to vector<10x50xi32>
    %4 = arith.cmpi eq, %3, %2 : vector<10x50xi32>
    %5 = arith.extui %4 : vector<10x50xi1> to vector<10x50xi32>
    %6 = arith.sitofp %5 : vector<10x50xi32> to vector<10x50xf32>
    %c0_2 = arith.constant 0 : index
    %c0_3 = arith.constant 0 : index
    %7 = vector.load %arg2[%c0_2, %c0_3] : memref<416x128xf32, #tpu.memory_space<vmem>>, vector<50x32xf32>
    %cst = arith.constant dense<0.000000e+00> : vector<10x32xf32>
    %8 = tpu.matmul %6, %7, %cst {dimension_numbers = #tpu.dot_dimension_numbers<[1], [0], [0], [1], [0, 0, 1, 1], [], []>} : vector<10x50xf32>, vector<50x32xf32>, vector<10x32xf32> -> vector<10x32xf32>
    %c56 = arith.constant 56 : index
    %c0_4 = arith.constant 0 : index
    %9 = vector.load %arg2[%c56, %c0_4] : memref<416x128xf32, #tpu.memory_space<vmem>>, vector<10x32xf32>
    %10 = arith.addf %8, %9 : vector<10x32xf32>
    %c72 = arith.constant 72 : index
    %c0_5 = arith.constant 0 : index
    %11 = vector.load %arg2[%c72, %c0_5] : memref<416x128xf32, #tpu.memory_space<vmem>>, vector<32x96xf32>
    %cst_6 = arith.constant dense<0.000000e+00> : vector<10x96xf32>
    %12 = tpu.matmul %10, %11, %cst_6 {dimension_numbers = #tpu.dot_dimension_numbers<[1], [0], [0], [1], [0, 0, 1, 1], [], []>} : vector<10x32xf32>, vector<32x96xf32>, vector<10x96xf32> -> vector<10x96xf32>
    %c104 = arith.constant 104 : index
    %c0_7 = arith.constant 0 : index
    %13 = vector.load %arg2[%c104, %c0_7] : memref<416x128xf32, #tpu.memory_space<vmem>>, vector<1x96xf32>
    %14 = vector.broadcast %13 : vector<1x96xf32> to vector<10x96xf32>
    %15 = arith.addf %12, %14 : vector<10x96xf32>
    %16 = vector.extract_strided_slice %15 {offsets = [0, 0], sizes = [10, 32], strides = [1, 1]} : vector<10x96xf32> to vector<10x32xf32>
    %17 = vector.extract_strided_slice %15 {offsets = [0, 32], sizes = [10, 32], strides = [1, 1]} : vector<10x96xf32> to vector<10x32xf32>
    %18 = vector.extract_strided_slice %15 {offsets = [0, 64], sizes = [10, 32], strides = [1, 1]} : vector<10x96xf32> to vector<10x32xf32>
    %c392 = arith.constant 392 : index
    %c0_8 = arith.constant 0 : index
    %19 = vector.load %arg2[%c392, %c0_8] : memref<416x128xf32, #tpu.memory_space<vmem>>, vector<10x10xf32>
    %c408 = arith.constant 408 : index
    %c0_9 = arith.constant 0 : index
    %20 = vector.load %arg2[%c408, %c0_9] : memref<416x128xf32, #tpu.memory_space<vmem>>, vector<4x32xf32>
    %cst_10 = arith.constant 0.000000e+00 : f32
    %21 = vector.broadcast %cst_10 : f32 to vector<10x32xf32>
    %22 = vector.extract_strided_slice %20 {offsets = [0, 0], sizes = [1, 32], strides = [1, 1]} : vector<4x32xf32> to vector<1x32xf32>
    %23 = vector.broadcast %22 : vector<1x32xf32> to vector<10x32xf32>
    %24 = arith.mulf %16, %23 : vector<10x32xf32>
    %cst_11 = arith.constant dense<0.000000e+00> : vector<10x10xf32>
    %25 = tpu.matmul %24, %17, %cst_11 {dimension_numbers = #tpu.dot_dimension_numbers<[1], [1], [0], [0], [0, 0, 1, 0], [], []>} : vector<10x32xf32>, vector<10x32xf32>, vector<10x10xf32> -> vector<10x10xf32>
    %cst_12 = arith.constant 0.353553385 : f32
    %26 = vector.broadcast %cst_12 : f32 to vector<10x10xf32>
    %27 = arith.mulf %25, %26 : vector<10x10xf32>
    %28 = arith.addf %27, %19 : vector<10x10xf32>
    %cst_13 = arith.constant dense<0xFF800000> : vector<10xf32>
    %29 = vector.multi_reduction <maximumf>, %28, %cst_13 [1] : vector<10x10xf32> to vector<10xf32>
    %30 = vector.shape_cast %29 : vector<10xf32> to vector<10x1xf32>
    %31 = vector.broadcast %30 : vector<10x1xf32> to vector<10x10xf32>
    %32 = arith.subf %28, %31 : vector<10x10xf32>
    %33 = math.exp %32 : vector<10x10xf32>
    %cst_14 = arith.constant dense<0.000000e+00> : vector<10xf32>
    %34 = vector.multi_reduction <add>, %33, %cst_14 [1] : vector<10x10xf32> to vector<10xf32>
    %35 = vector.shape_cast %34 : vector<10xf32> to vector<10x1xf32>
    %36 = tpu.reciprocal %35 {approx = true} : vector<10x1xf32> -> vector<10x1xf32>
    %37 = vector.broadcast %36 : vector<10x1xf32> to vector<10x10xf32>
    %38 = arith.mulf %33, %37 : vector<10x10xf32>
    %39 = vector.broadcast %22 : vector<1x32xf32> to vector<10x32xf32>
    %40 = arith.mulf %18, %39 : vector<10x32xf32>
    %cst_15 = arith.constant dense<0.000000e+00> : vector<10x32xf32>
    %41 = tpu.matmul %38, %40, %cst_15 {dimension_numbers = #tpu.dot_dimension_numbers<[1], [0], [0], [1], [0, 0, 1, 1], [], []>} : vector<10x10xf32>, vector<10x32xf32>, vector<10x32xf32> -> vector<10x32xf32>
    %42 = arith.addf %21, %41 : vector<10x32xf32>
    %43 = vector.extract_strided_slice %20 {offsets = [1, 0], sizes = [1, 32], strides = [1, 1]} : vector<4x32xf32> to vector<1x32xf32>
    %44 = vector.broadcast %43 : vector<1x32xf32> to vector<10x32xf32>
    %45 = arith.mulf %16, %44 : vector<10x32xf32>
    %cst_16 = arith.constant dense<0.000000e+00> : vector<10x10xf32>
    %46 = tpu.matmul %45, %17, %cst_16 {dimension_numbers = #tpu.dot_dimension_numbers<[1], [1], [0], [0], [0, 0, 1, 0], [], []>} : vector<10x32xf32>, vector<10x32xf32>, vector<10x10xf32> -> vector<10x10xf32>
    %cst_17 = arith.constant 0.353553385 : f32
    %47 = vector.broadcast %cst_17 : f32 to vector<10x10xf32>
    %48 = arith.mulf %46, %47 : vector<10x10xf32>
    %49 = arith.addf %48, %19 : vector<10x10xf32>
    %cst_18 = arith.constant dense<0xFF800000> : vector<10xf32>
    %50 = vector.multi_reduction <maximumf>, %49, %cst_18 [1] : vector<10x10xf32> to vector<10xf32>
    %51 = vector.shape_cast %50 : vector<10xf32> to vector<10x1xf32>
    %52 = vector.broadcast %51 : vector<10x1xf32> to vector<10x10xf32>
    %53 = arith.subf %49, %52 : vector<10x10xf32>
    %54 = math.exp %53 : vector<10x10xf32>
    %cst_19 = arith.constant dense<0.000000e+00> : vector<10xf32>
    %55 = vector.multi_reduction <add>, %54, %cst_19 [1] : vector<10x10xf32> to vector<10xf32>
    %56 = vector.shape_cast %55 : vector<10xf32> to vector<10x1xf32>
    %57 = tpu.reciprocal %56 {approx = true} : vector<10x1xf32> -> vector<10x1xf32>
    %58 = vector.broadcast %57 : vector<10x1xf32> to vector<10x10xf32>
    %59 = arith.mulf %54, %58 : vector<10x10xf32>
    %60 = vector.broadcast %43 : vector<1x32xf32> to vector<10x32xf32>
    %61 = arith.mulf %18, %60 : vector<10x32xf32>
    %cst_20 = arith.constant dense<0.000000e+00> : vector<10x32xf32>
    %62 = tpu.matmul %59, %61, %cst_20 {dimension_numbers = #tpu.dot_dimension_numbers<[1], [0], [0], [1], [0, 0, 1, 1], [], []>} : vector<10x10xf32>, vector<10x32xf32>, vector<10x32xf32> -> vector<10x32xf32>
    %63 = arith.addf %42, %62 : vector<10x32xf32>
    %64 = vector.extract_strided_slice %20 {offsets = [2, 0], sizes = [1, 32], strides = [1, 1]} : vector<4x32xf32> to vector<1x32xf32>
    %65 = vector.broadcast %64 : vector<1x32xf32> to vector<10x32xf32>
    %66 = arith.mulf %16, %65 : vector<10x32xf32>
    %cst_21 = arith.constant dense<0.000000e+00> : vector<10x10xf32>
    %67 = tpu.matmul %66, %17, %cst_21 {dimension_numbers = #tpu.dot_dimension_numbers<[1], [1], [0], [0], [0, 0, 1, 0], [], []>} : vector<10x32xf32>, vector<10x32xf32>, vector<10x10xf32> -> vector<10x10xf32>
    %cst_22 = arith.constant 0.353553385 : f32
    %68 = vector.broadcast %cst_22 : f32 to vector<10x10xf32>
    %69 = arith.mulf %67, %68 : vector<10x10xf32>
    %70 = arith.addf %69, %19 : vector<10x10xf32>
    %cst_23 = arith.constant dense<0xFF800000> : vector<10xf32>
    %71 = vector.multi_reduction <maximumf>, %70, %cst_23 [1] : vector<10x10xf32> to vector<10xf32>
    %72 = vector.shape_cast %71 : vector<10xf32> to vector<10x1xf32>
    %73 = vector.broadcast %72 : vector<10x1xf32> to vector<10x10xf32>
    %74 = arith.subf %70, %73 : vector<10x10xf32>
    %75 = math.exp %74 : vector<10x10xf32>
    %cst_24 = arith.constant dense<0.000000e+00> : vector<10xf32>
    %76 = vector.multi_reduction <add>, %75, %cst_24 [1] : vector<10x10xf32> to vector<10xf32>
    %77 = vector.shape_cast %76 : vector<10xf32> to vector<10x1xf32>
    %78 = tpu.reciprocal %77 {approx = true} : vector<10x1xf32> -> vector<10x1xf32>
    %79 = vector.broadcast %78 : vector<10x1xf32> to vector<10x10xf32>
    %80 = arith.mulf %75, %79 : vector<10x10xf32>
    %81 = vector.broadcast %64 : vector<1x32xf32> to vector<10x32xf32>
    %82 = arith.mulf %18, %81 : vector<10x32xf32>
    %cst_25 = arith.constant dense<0.000000e+00> : vector<10x32xf32>
    %83 = tpu.matmul %80, %82, %cst_25 {dimension_numbers = #tpu.dot_dimension_numbers<[1], [0], [0], [1], [0, 0, 1, 1], [], []>} : vector<10x10xf32>, vector<10x32xf32>, vector<10x32xf32> -> vector<10x32xf32>
    %84 = arith.addf %63, %83 : vector<10x32xf32>
    %85 = vector.extract_strided_slice %20 {offsets = [3, 0], sizes = [1, 32], strides = [1, 1]} : vector<4x32xf32> to vector<1x32xf32>
    %86 = vector.broadcast %85 : vector<1x32xf32> to vector<10x32xf32>
    %87 = arith.mulf %16, %86 : vector<10x32xf32>
    %cst_26 = arith.constant dense<0.000000e+00> : vector<10x10xf32>
    %88 = tpu.matmul %87, %17, %cst_26 {dimension_numbers = #tpu.dot_dimension_numbers<[1], [1], [0], [0], [0, 0, 1, 0], [], []>} : vector<10x32xf32>, vector<10x32xf32>, vector<10x10xf32> -> vector<10x10xf32>
    %cst_27 = arith.constant 0.353553385 : f32
    %89 = vector.broadcast %cst_27 : f32 to vector<10x10xf32>
    %90 = arith.mulf %88, %89 : vector<10x10xf32>
    %91 = arith.addf %90, %19 : vector<10x10xf32>
    %cst_28 = arith.constant dense<0xFF800000> : vector<10xf32>
    %92 = vector.multi_reduction <maximumf>, %91, %cst_28 [1] : vector<10x10xf32> to vector<10xf32>
    %93 = vector.shape_cast %92 : vector<10xf32> to vector<10x1xf32>
    %94 = vector.broadcast %93 : vector<10x1xf32> to vector<10x10xf32>
    %95 = arith.subf %91, %94 : vector<10x10xf32>
    %96 = math.exp %95 : vector<10x10xf32>
    %cst_29 = arith.constant dense<0.000000e+00> : vector<10xf32>
    %97 = vector.multi_reduction <add>, %96, %cst_29 [1] : vector<10x10xf32> to vector<10xf32>
    %98 = vector.shape_cast %97 : vector<10xf32> to vector<10x1xf32>
    %99 = tpu.reciprocal %98 {approx = true} : vector<10x1xf32> -> vector<10x1xf32>
    %100 = vector.broadcast %99 : vector<10x1xf32> to vector<10x10xf32>
    %101 = arith.mulf %96, %100 : vector<10x10xf32>
    %102 = vector.broadcast %85 : vector<1x32xf32> to vector<10x32xf32>
    %103 = arith.mulf %18, %102 : vector<10x32xf32>
    %cst_30 = arith.constant dense<0.000000e+00> : vector<10x32xf32>
    %104 = tpu.matmul %101, %103, %cst_30 {dimension_numbers = #tpu.dot_dimension_numbers<[1], [0], [0], [1], [0, 0, 1, 1], [], []>} : vector<10x10xf32>, vector<10x32xf32>, vector<10x32xf32> -> vector<10x32xf32>
    %105 = arith.addf %84, %104 : vector<10x32xf32>
    %c112 = arith.constant 112 : index
    %c0_31 = arith.constant 0 : index
    %106 = vector.load %arg2[%c112, %c0_31] : memref<416x128xf32, #tpu.memory_space<vmem>>, vector<32x32xf32>
    %cst_32 = arith.constant dense<0.000000e+00> : vector<10x32xf32>
    %107 = tpu.matmul %105, %106, %cst_32 {dimension_numbers = #tpu.dot_dimension_numbers<[1], [0], [0], [1], [0, 0, 1, 1], [], []>} : vector<10x32xf32>, vector<32x32xf32>, vector<10x32xf32> -> vector<10x32xf32>
    %c144 = arith.constant 144 : index
    %c0_33 = arith.constant 0 : index
    %108 = vector.load %arg2[%c144, %c0_33] : memref<416x128xf32, #tpu.memory_space<vmem>>, vector<1x32xf32>
    %109 = vector.broadcast %108 : vector<1x32xf32> to vector<10x32xf32>
    %110 = arith.addf %107, %109 : vector<10x32xf32>
    %cst_34 = arith.constant 0.000000e+00 : f32
    %111 = vector.broadcast %cst_34 : f32 to vector<2x64xf32>
    %112 = vector.extract_strided_slice %110 {offsets = [0, 0], sizes = [2, 32], strides = [1, 1]} : vector<10x32xf32> to vector<2x32xf32>
    %c152 = arith.constant 152 : index
    %c0_35 = arith.constant 0 : index
    %113 = vector.load %arg2[%c152, %c0_35] : memref<416x128xf32, #tpu.memory_space<vmem>>, vector<32x64xf32>
    %cst_36 = arith.constant dense<0.000000e+00> : vector<2x64xf32>
    %114 = tpu.matmul %112, %113, %cst_36 {dimension_numbers = #tpu.dot_dimension_numbers<[1], [0], [0], [1], [0, 0, 1, 1], [], []>} : vector<2x32xf32>, vector<32x64xf32>, vector<2x64xf32> -> vector<2x64xf32>
    %115 = arith.addf %111, %114 : vector<2x64xf32>
    %116 = vector.extract_strided_slice %110 {offsets = [2, 0], sizes = [2, 32], strides = [1, 1]} : vector<10x32xf32> to vector<2x32xf32>
    %c184 = arith.constant 184 : index
    %c0_37 = arith.constant 0 : index
    %117 = vector.load %arg2[%c184, %c0_37] : memref<416x128xf32, #tpu.memory_space<vmem>>, vector<32x64xf32>
    %cst_38 = arith.constant dense<0.000000e+00> : vector<2x64xf32>
    %118 = tpu.matmul %116, %117, %cst_38 {dimension_numbers = #tpu.dot_dimension_numbers<[1], [0], [0], [1], [0, 0, 1, 1], [], []>} : vector<2x32xf32>, vector<32x64xf32>, vector<2x64xf32> -> vector<2x64xf32>
    %119 = arith.addf %115, %118 : vector<2x64xf32>
    %120 = vector.extract_strided_slice %110 {offsets = [4, 0], sizes = [2, 32], strides = [1, 1]} : vector<10x32xf32> to vector<2x32xf32>
    %c216 = arith.constant 216 : index
    %c0_39 = arith.constant 0 : index
    %121 = vector.load %arg2[%c216, %c0_39] : memref<416x128xf32, #tpu.memory_space<vmem>>, vector<32x64xf32>
    %cst_40 = arith.constant dense<0.000000e+00> : vector<2x64xf32>
    %122 = tpu.matmul %120, %121, %cst_40 {dimension_numbers = #tpu.dot_dimension_numbers<[1], [0], [0], [1], [0, 0, 1, 1], [], []>} : vector<2x32xf32>, vector<32x64xf32>, vector<2x64xf32> -> vector<2x64xf32>
    %123 = arith.addf %119, %122 : vector<2x64xf32>
    %124 = vector.extract_strided_slice %110 {offsets = [6, 0], sizes = [2, 32], strides = [1, 1]} : vector<10x32xf32> to vector<2x32xf32>
    %c248 = arith.constant 248 : index
    %c0_41 = arith.constant 0 : index
    %125 = vector.load %arg2[%c248, %c0_41] : memref<416x128xf32, #tpu.memory_space<vmem>>, vector<32x64xf32>
    %cst_42 = arith.constant dense<0.000000e+00> : vector<2x64xf32>
    %126 = tpu.matmul %124, %125, %cst_42 {dimension_numbers = #tpu.dot_dimension_numbers<[1], [0], [0], [1], [0, 0, 1, 1], [], []>} : vector<2x32xf32>, vector<32x64xf32>, vector<2x64xf32> -> vector<2x64xf32>
    %127 = arith.addf %123, %126 : vector<2x64xf32>
    %128 = vector.extract_strided_slice %110 {offsets = [8, 0], sizes = [2, 32], strides = [1, 1]} : vector<10x32xf32> to vector<2x32xf32>
    %c280 = arith.constant 280 : index
    %c0_43 = arith.constant 0 : index
    %129 = vector.load %arg2[%c280, %c0_43] : memref<416x128xf32, #tpu.memory_space<vmem>>, vector<32x64xf32>
    %cst_44 = arith.constant dense<0.000000e+00> : vector<2x64xf32>
    %130 = tpu.matmul %128, %129, %cst_44 {dimension_numbers = #tpu.dot_dimension_numbers<[1], [0], [0], [1], [0, 0, 1, 1], [], []>} : vector<2x32xf32>, vector<32x64xf32>, vector<2x64xf32> -> vector<2x64xf32>
    %131 = arith.addf %127, %130 : vector<2x64xf32>
    %c312 = arith.constant 312 : index
    %c0_45 = arith.constant 0 : index
    %132 = vector.load %arg2[%c312, %c0_45] : memref<416x128xf32, #tpu.memory_space<vmem>>, vector<1x64xf32>
    %133 = vector.broadcast %132 : vector<1x64xf32> to vector<2x64xf32>
    %134 = arith.addf %131, %133 : vector<2x64xf32>
    %cst_46 = arith.constant 0.000000e+00 : f32
    %135 = vector.broadcast %cst_46 : f32 to vector<2x64xf32>
    %136 = arith.maximumf %134, %135 : vector<2x64xf32>
    %c320 = arith.constant 320 : index
    %c0_47 = arith.constant 0 : index
    %137 = vector.load %arg2[%c320, %c0_47] : memref<416x128xf32, #tpu.memory_space<vmem>>, vector<64x50xf32>
    %cst_48 = arith.constant dense<0.000000e+00> : vector<2x50xf32>
    %138 = tpu.matmul %136, %137, %cst_48 {dimension_numbers = #tpu.dot_dimension_numbers<[1], [0], [0], [1], [0, 0, 1, 1], [], []>} : vector<2x64xf32>, vector<64x50xf32>, vector<2x50xf32> -> vector<2x50xf32>
    %c384 = arith.constant 384 : index
    %c0_49 = arith.constant 0 : index
    %139 = vector.load %arg2[%c384, %c0_49] : memref<416x128xf32, #tpu.memory_space<vmem>>, vector<1x50xf32>
    %140 = vector.broadcast %139 : vector<1x50xf32> to vector<2x50xf32>
    %141 = arith.addf %138, %140 : vector<2x50xf32>
    %c0_50 = arith.constant 0 : index
    %c0_51 = arith.constant 0 : index
    %c0_52 = arith.constant 0 : index
    %142 = vector.load %arg3[%c0_50, %c0_51, %c0_52] : memref<1x2x50xf32, #tpu.memory_space<vmem>>, vector<1x2x50xf32>
    %143 = vector.shape_cast %142 : vector<1x2x50xf32> to vector<2x50xf32>
    %144 = vector.shape_cast %141 : vector<2x50xf32> to vector<1x2x50xf32>
    tpu.vector_store %arg3[%c0_50, %c0_51, %c0_52], %144 {strides = array<i32>} : memref<1x2x50xf32, #tpu.memory_space<vmem>>, vector<1x2x50xf32>,
    return
  }
  func.func @transform_0(%arg0: i32) -> (i32, i32, i32) {
    %c0_i32 = arith.constant 0 : i32
    %c0_i32_0 = arith.constant 0 : i32
    %c0_i32_1 = arith.constant 0 : i32
    return %arg0, %c0_i32, %c0_i32_0 : i32, i32, i32
  }
  func.func @transform_1(%arg0: i32) -> (i32, i32) {
    %c0_i32 = arith.constant 0 : i32
    %c0_i32_0 = arith.constant 0 : i32
    %c0_i32_1 = arith.constant 0 : i32
    return %c0_i32, %c0_i32_0 : i32, i32
  }
  func.func @transform_2(%arg0: i32) -> (i32, i32, i32) {
    %c0_i32 = arith.constant 0 : i32
    %c0_i32_0 = arith.constant 0 : i32
    %c0_i32_1 = arith.constant 0 : i32
    return %arg0, %c0_i32, %c0_i32_0 : i32, i32, i32
  }
}

</mosaic_0001>

<bundles_post_ra>
// kernel: pvt_forward.1
= control target key start
LH: loop header
LB: loop body
LE: loop exit
PB: predicated region body
PF: predicated region fallthrough
CT: control target
= control target key end

     0   :  { %7 = vsyncpa [#allocation3], 0  ;;  %s1489_s0 = inlined_call_operand.vmem [shape: s32[4,10,1], index: 0, kind: input, shape index: {}]   ;;  %s1490_s1 = inlined_call_operand.hbm [shape: f32[416,128], index: 1, kind: input, shape index: {}]   ;;  %s1491_s2 = inlined_call_operand.hbm [shape: f32[4,2,50], index: 2, kind: output, shape index: {}]  }
   0x1   :  { %8 = vsyncpa [#allocation4], 0 }
   0x2   :  { %10 = vsyncpa [#allocation4 + $0x1], 0  ;;  %s1253_s9 = smov 0   ;;  %s1255_s10 = smov 0  }
   0x3   :  { %s1257_s11 = smov 0   ;;  %s1259_s12 = smov 0  }
   0x4 LB: > { %s1274_s13 = sadd.s32 4294967295, %s1229_s12   ;;  %s981_s14 = sadd.s32 4294967294, %s1229_s12   ;;  %s1229_s12 = sphi %s1259_s12, %s1497_s12   ;;  %s1225_s11 = sphi %s1257_s11, %s1496_s11   ;;  %s1221_s10 = sphi %s1255_s10, %s1495_s10   ;;  %s1217_s9 = sphi %s1253_s9, %s1494_s9  }
   0x5   : > { %s1278_s15 = sadd.s32 1, %s1229_s12   ;;  %s70_s16 = sadd.s32 1, %s1225_s11 }
   0x6   : > { %s67_s17 = ssub.s32 %s1229_s12, %s1278_s15  ;;  %p80_p0 = scmp.ne.s32.totalorder %s1225_s11, %s1221_s10 }
   0x7   : > { %p68_p1 = scmp.eq.s32.totalorder %s67_s17, 0  ;;  %p81_p2 = scmp.eq.s32.totalorder %s1274_s13, 3 }
   0x8   : > { %p86_p3 = scmp.ne.s32.totalorder %s1221_s10, %s1217_s9  ;;  %p87_p4 = scmp.eq.s32.totalorder %s981_s14, 3 }
   0x9   : > { %s1289_s18 = scalar_select %p68_p1, %s1225_s11, %s70_s16  }
   0xa   : > { %p1291_p5 = por %p81_p2, %p80_p0  ;;  %p1295_p6 = por %p87_p4, %p86_p3 }
   0xb   : > { %p982_p7 = scmp.ge.s32.totalorder %s1229_s12, 1  ;;  %p94_p8 = scmp.lt.s32.totalorder %s1229_s12, 5 }
   0xc   : > { %p1054_p9 = scmp.eq.s32.totalorder %s1274_s13, 0  ;;  %s105_s23 = sshll.u32 %s1490_s1, 4  ;;  %s106_s23 = int_to_ptr.hbm [resolvable:$true] %s105_s23 }
   0xd   : > { %p95_p10 = pnand %p982_p7, %p94_p8  ;;  %s1231_s24 = smov [#allocation2]  }
   0xe   : > { %s107_s25 = sshll.u32 %s1231_s24, 4  ;;  %s1232_s26 = smov 128   ;;  %s108_s25 = int_to_ptr.vmem [resolvable:$true] %s107_s25 }
   0xf   : > { %p1046_p11 = pneg %p95_p10  ;;  %s1233_s27 = smov 8  }
  0x10   : > { %131 = sbr.rel (%p95_p10) target bundleno = 1918 (0x77e), region = 28 }
  0x11   : > { %p1047_p12 = pnand %p1054_p9, %p1046_p11 }
  0x13   : > { %1049 = dma.hbm_to_vmem [thread:$0]  (!%p1047_p12), %s106_s23, 6656, %s108_s25, [#allocation3], %s1232_s26, %s1232_s26, %s1233_s27  }
  0x15   : > { %1208 = dma.done.wait (%p1054_p9), [#allocation3], 6656  }
  0x16   : > { %1210 = vsyncadd (%p1054_p9), [#allocation3], 4294960640  ;;  %p154_p13 = scmp.lt.s32.totalorder %s1274_s13, 3  ;;  %v1234_v0 = vmov 0   ;;  %vm191_vm0 = vcmask 1041408   ;;  %v180_v3 = vld [vmem:[#allocation2 + $0x28] sm:$0xff]  ;;  %v161_v12 = vlaneseq }
  0x17   : > { %1096 = vset.pattern.permute.xlu0 %v1234_v0  ;;  %v181_v2 = vld [vmem:[#allocation2 + $0x30] sm:$0x3]  ;;  %v179_v4 = vld [vmem:[#allocation2 + $0x20] sm:$0xff]  ;;  %v178_v5 = vld [vmem:[#allocation2 + $0x18] sm:$0xff]  ;;  %vm184_vm1 = vcmask 408576   ;;  %v1235_v15 = vmov 0.0  }
  0x18   : > { %s155_s28 = scalar_select %p154_p13, %s1274_s13, 3  ;;  %992 = vmatpush.msk.msra.mxu0 %vm191_vm0, %v181_v2  ;;  %v177_v7 = vld [vmem:[#allocation2 + $0x10] sm:$0xff]  ;;  %v176_v8 = vld [vmem:[#allocation2 + $0x8] sm:$0xff]  ;;  %v175_v9 = vld [vmem:[#allocation2] sm:$0xff]  ;;  %v162_v13 = vand.u32 127, %v161_v12  ;;  %vm224_vm4 = vcmask 261120  }
  0x19   : > { %v221_v10 = vld [vmem:[#allocation2 + $0x60] sm:$0xff]  ;;  %v220_v11 = vld [vmem:[#allocation2 + $0x58] sm:$0xff]  ;;  %v219_v19 = vld [vmem:[#allocation2 + $0x50] sm:$0xff]  ;;  %s1236_s5 = smov 96   ;;  %s1237_s6 = smov 64   ;;  %vm303_vm5 = vcmask 80896  }
  0x1a   : > { %s1037_s29 = sshll.u32 %s155_s28, 4  ;;  %205 = vmatpush.msra.mxu0 %v180_v3  ;;  %243 = vmatpush.msra.mxu1 %v221_v10  ;;  %v218_v20 = vld [vmem:[#allocation2 + $0x48] sm:$0xff]  ;;  %v182_v21 = vld [vmem:[#allocation2 + $0x38] sm:$0xff]  ;;  %v183_v24 = vld [vmem:[#allocation2 + $0x40] sm:$0x3]  ;;  %vm307_vm6 = vcmask 74752  }
  0x1b   : > { %s158_s4 = scalar_lea.vmem %s1489_s0, %s1037_s29  ;;  %v1097_v28 = vld [vmem:[#allocation2 + $0x68] ss:$0 sm:$0xff]  ;;  %v1325_v32 = vld [vmem:[#allocation2 + $0x198] sm:$0xf]  ;;  %v1367_v50 = vld [vmem:[#allocation2 + $0x190] sm:$0x3] }
  0x1c   : > { %v159_v1 = vld [vmem:[%s158_s4] sm:$0xff]  ;;  %206 = vmatpush.msra.mxu0 %v179_v4  ;;  %v160_v6 = vld [vmem:[%s158_s4 + $0x8] sm:$0x3]  ;;  %244 = vmatpush.msra.mxu1 %v220_v11  ;;  %v333_v33 = vperm.slane %v1325_v32, 1  ;;  %v1336_v35 = vperm.slane %v1325_v32, 0  ;;  %v473_v41 = vperm.slane %v1325_v32, 2 }
  0x1d   : > { %164 = vperm.xlu0 %1096, %v159_v1   ;;  %v1363_v45 = vld [vmem:[#allocation2 + $0x188] sm:$0xff]  ;;  %vm868_vm7 = vcmask 523264   ;;  %s151_s7 = sand.u32 1, %s1221_s10   ;;  %s1034_s14 = sshll.u32 %s1274_s13, 1  ;;  %vm892_vm8 = vcmask 402432  }
  0x1e   : > { %207 = vmatpush.msra.mxu0 %v178_v5  ;;  %245 = vmatpush.msra.mxu1 %v219_v19  ;;  %s987_s8 = sshll.u32 %s151_s7, 1  ;;  %s905_s21 = scalar_lea.hbm %s1491_s2, %s1034_s14 }
  0x1f   : > { %s153_s22 = scalar_lea.vmem [#allocation5], %s987_s8  ;;  %s909_s24 = sshll.u32 %s905_s21, 4  ;;  %s910_s24 = int_to_ptr.hbm [resolvable:$true] %s909_s24 }
  0x20   : > { %208 = vmatpush.msra.mxu0 %v177_v7  ;;  %246 = vmatpush.msra.mxu1 %v218_v20  ;;  %s907_s23 = sshll.u32 %s153_s22, 4  ;;  %s895_s25 = scalar_lea.sflag [#allocation4], %s151_s7  ;;  %s908_s23 = int_to_ptr.vmem [resolvable:$true] %s907_s23 }
  0x21   : > { %s1177_s26 = sshra.s32 %s910_s24, 4  ;;  %s1183_s29 = scalar_lea.hbm %s1491_s2, 8  ;;  %s1178_s26 = int_to_ptr.hbm [resolvable:$true] %s1177_s26 }
  0x22   : > { %209 = vmatpush.msra.mxu0 %v176_v8  ;;  %s1179_s27 = scalar_lea.hbm %s1178_s26, 2  ;;  %p1184_p3 = scmp.lt.s32.totalorder %s1178_s26, %s1491_s2 }
  0x23   : > { %p1180_p0 = scmp.ne.s32.totalorder %s1178_s26, %s1179_s27  ;;  %p1185_p4 = scmp.lt.s32.totalorder %s1183_s29, %s1179_s27 }
  0x24   : > { %210 = vmatpush.msra.mxu0 %v175_v9 }
  0x25   : > { %167 = vperm.xlu0 %1096, %v160_v6   ;;  %p1181_p1 = pnand %p1180_p0, %p1291_p5  ;;  %p1186_p7 = por %p1185_p4, %p1184_p3 }
  0x27   : > { %p1182_p2 = pneg %p1181_p1 }
  0x29   : > { %p1187_p8 = pnand %p1186_p7, %p1182_p2 }
  0x8f   : > { %v165_v14 = vpop.permute.xlu0 %164 }
  0x90   : > { %vm169_vm2 = vcmp.eq.s32.totalorder %v165_v14, %v162_v13 }
  0x91   : > { %v990_v16 = vsel %vm169_vm2, 1.0, %v1235_v15 }
  0x92   : > { %993 = vmatmul.msk.f32.vlgmr.msra.gmra.mxu0 %vm184_vm1, %v990_v16 }
  0x97   : > { %v168_v17 = vpop.permute.xlu0 %167 }
  0x98   : > { %vm170_vm3 = vcmp.eq.s32.totalorder %v168_v17, %v162_v13 }
  0x99   : > { %v991_v18 = vsel %vm170_vm3, 1.0, %v1235_v15 }
  0x9a   : > { %994 = vmatmul.msk.f32.gmra.mxu0 %vm184_vm1, %v991_v18 }
 0x10f   : > { %v212_v22 = vpop.f32.mrf.mxu0 }
 0x110   : > { %v213_v23 = vadd.f32 %v212_v22, %v182_v21 }
 0x112   : > { %995 = vmatmul.msk.f32.vlgmr.msra.gmra.mxu1 %vm224_vm4, %v213_v23 }
 0x117   : > { %v215_v25 = vpop.f32.mrf.mxu0 }
 0x118   : > { %v216_v26 = vadd.f32 %v215_v25, %v183_v24 }
 0x11a   : > { %996 = vmatmul.msk.f32.gmra.mxu1 %vm224_vm4, %v216_v26 }
 0x18f   : > { %v248_v27 = vpop.f32.mrf.mxu1 }
 0x190   : > { %v1322_v31 = vadd.f32 %v1097_v28, %v248_v27  ;;  %v577_v27 = vperm.slane %v1325_v32, 3 }
 0x192   : > { %v258_v37 = vmul.f32 %v1336_v35, %v1322_v31  ;;  %v334_v38 = vmul.f32 %v333_v33, %v1322_v31  ;;  %v474_v42 = vmul.f32 %v473_v41, %v1322_v31 }
 0x197   : > { %v251_v29 = vpop.f32.mrf.mxu1 }
 0x198   : > { %v1319_v30 = vadd.f32 %v1097_v28, %v251_v29 }
 0x19a   : > { %264 = vrot.lane.b32.xlu1 %v1319_v30, %s1236_s5  ;;  %v259_v39 = vmul.f32 %v1336_v35, %v1319_v30  ;;  %v335_v40 = vmul.f32 %v333_v33, %v1319_v30  ;;  %v475_v43 = vmul.f32 %v473_v41, %v1319_v30 }
 0x1a2   : > { %262 = vrot.lane.b32.xlu1 %v1322_v31, %s1236_s5 }
 0x1aa   : > { %392 = vrot.lane.b32.xlu1 %v333_v33, %s1237_s6 }
 0x20c   : > { %v1329_v34 = vpop.permute.xlu1 %264 }
 0x20d   : > { %997 = vmatpush.xpose.msk.msra.mxu2 %vm224_vm4, %v1329_v34  ;;  %1001 = vmatpush.xpose.msk.msra.mxu3 %vm224_vm4, %v1329_v34 }
 0x214   : > { %v1338_v36 = vpop.permute.xlu1 %262 }
 0x215   : > { %998 = vmatpush.xpose.msk.msra.mxu2 %vm224_vm4, %v1338_v36  ;;  %1002 = vmatpush.xpose.msk.msra.mxu3 %vm224_vm4, %v1338_v36 }
 0x218   : > { %999 = vmatmul.msk.f32.vlgmr.msra.gmra.mxu2 %vm224_vm4, %v258_v37  ;;  %1003 = vmatmul.msk.f32.vlgmr.msra.gmra.mxu3 %vm224_vm4, %v334_v38 }
 0x219   : > { %1011 = vmatpush.xpose.msk.msrb.mxu3 %vm224_vm4, %v1329_v34 }
 0x21c   : > { %v393_v59 = vpop.permute.xlu1 %392 }
 0x21d   : > { %1012 = vmatpush.xpose.msk.msrb.mxu3 %vm224_vm4, %v1338_v36  ;;  %v396_v60 = vmul.f32 %v393_v59, %v1319_v30  ;;  %v395_v61 = vmul.f32 %v393_v59, %v1322_v31 }
 0x220   : > { %1000 = vmatmul.msk.f32.gmra.mxu2 %vm224_vm4, %v259_v39  ;;  %1004 = vmatmul.msk.f32.gmra.mxu3 %vm224_vm4, %v335_v40 }
 0x228   : > { %1013 = vmatmul.msk.f32.vlgmr.msrb.gmra.mxu3 %vm224_vm4, %v474_v42 }
 0x230   : > { %1014 = vmatmul.msk.f32.gmra.mxu3 %vm224_vm4, %v475_v43 }
 0x29b   : > { %v359_v44 = vpop.f32.mrf.mxu3  ;;  %v293_v1 = vpop.f32.mrf.mxu2 }
 0x29c   : > { %v365_v46 = vmul.f32 0.35355338, %v359_v44  ;;  %v299_v25 = vmul.f32 0.35355338, %v293_v1 }
 0x29e   : > { %v367_v47 = vadd.f32 %v365_v46, %v1363_v45  ;;  %v301_v26 = vadd.f32 %v299_v25, %v1363_v45 }
 0x2a0   : > { %v369_v48 = vsel %vm303_vm5, %v367_v47, -inf  ;;  %v304_v29 = vsel %vm303_vm5, %v301_v26, -inf }
 0x2a1   : > { %370 = vmax.xlane.f32.xlu2 %v369_v48 }
 0x2a3   : > { %v362_v49 = vpop.f32.mrf.mxu3  ;;  %v296_v8 = vpop.f32.mrf.mxu2 }
 0x2a4   : > { %v366_v51 = vmul.f32 0.35355338, %v362_v49  ;;  %v300_v11 = vmul.f32 0.35355338, %v296_v8 }
 0x2a6   : > { %v368_v52 = vadd.f32 %v366_v51, %v1367_v50  ;;  %v302_v15 = vadd.f32 %v300_v11, %v1367_v50 }
 0x2a8   : > { %v372_v53 = vsel %vm307_vm6, %v368_v52, -inf  ;;  %v308_v19 = vsel %vm307_vm6, %v302_v15, -inf }
 0x2a9   : > { %373 = vmax.xlane.f32.xlu2 %v372_v53 }
 0x2ab   : > { %v499_v54 = vpop.f32.mrf.mxu3 }
 0x2ac   : > { %v505_v18 = vmul.f32 0.35355338, %v499_v54 }
 0x2ae   : > { %v1386_v20 = vadd.f32 %v505_v18, %v1363_v45 }
 0x2b0   : > { %v509_v23 = vsel %vm303_vm5, %v1386_v20, -inf }
 0x2b3   : > { %v502_v55 = vpop.f32.mrf.mxu3 }
 0x2b4   : > { %v506_v56 = vmul.f32 0.35355338, %v502_v55  ;;  %v578_v55 = vmul.f32 %v577_v27, %v1322_v31 }
 0x2b6   : > { %v508_v57 = vadd.f32 %v506_v56, %v1367_v50 }
 0x2b8   : > { %v512_v58 = vsel %vm307_vm6, %v508_v57, -inf }
 0x2b9   : > { %513 = vmax.xlane.f32.xlu0 %v512_v58  ;;  %v579_v58 = vmul.f32 %v577_v27, %v1319_v30 }
 0x2c1   : > { %532 = vrot.lane.b32.xlu2 %v473_v41, %s1237_s6 }
 0x2c9   : > { %401 = vrot.lane.b32.xlu2 %v396_v60, %s1237_s6 }
 0x2cd   : > { %399 = vrot.lane.b32.xlu0 %v395_v61, %s1237_s6 }
 0x314   : > { %v371_v62 = vpop.xlane.xlu2 %370 }
 0x315   : > { %v375_v63 = vsub.f32 %v367_v47, %v371_v62 }
 0x317   : > { %v377_v0 = vmul.f32 1.442695, %v375_v63 }
 0x319   : > { %1101 = vpow2.f32 %v377_v0 }
 0x31c   : > { %v374_v2 = vpop.xlane.xlu2 %373 }
 0x31d   : > { %v376_v3 = vsub.f32 %v368_v52, %v374_v2 }
 0x31f   : > { %v1102_v4 = vpop.eup %1101  ;;  %v379_v5 = vmul.f32 1.442695, %v376_v3 }
 0x320   : > { %v381_v6 = vsel %vm303_vm5, %v1102_v4, 0.0 }
 0x321   : > { %1103 = vpow2.f32 %v379_v5  ;;  %382 = vadd.xlane.f32.xlu1 %v381_v6 }
 0x324   : > { %v533_v7 = vpop.permute.xlu2 %532 }
 0x325   : > { %v535_v9 = vmul.f32 %v533_v7, %v1322_v31  ;;  %v536_v28 = vmul.f32 %v533_v7, %v1319_v30 }
 0x327   : > { %v1104_v10 = vpop.eup %1103  ;;  %539 = vrot.lane.b32.xlu0 %v535_v9, %s1237_s6 }
 0x328   : > { %v384_v12 = vsel %vm307_vm6, %v1104_v10, 0.0 }
 0x329   : > { %385 = vadd.xlane.f32.xlu2 %v384_v12 }
 0x32c   : > { %v514_v13 = vpop.xlane.xlu0 %513  ;;  %v402_v14 = vpop.permute.xlu2 %401 }
 0x32d   : > { %v516_v16 = vsub.f32 %v508_v57, %v514_v13  ;;  %1005 = vmatpush.msk.msrb.mxu1 %vm191_vm0, %v402_v14 }
 0x32f   : > { %v519_v17 = vmul.f32 1.442695, %v516_v16 }
 0x331   : > { %1105 = vpow2.f32 %v519_v17  ;;  %309 = vmax.xlane.f32.xlu2 %v308_v19 }
 0x337   : > { %v1106_v21 = vpop.eup %1105 }
 0x338   : > { %v524_v22 = vsel %vm307_vm6, %v1106_v21, 0.0 }
 0x339   : > { %525 = vadd.xlane.f32.xlu1 %v524_v22  ;;  %510 = vmax.xlane.f32.xlu2 %v509_v23 }
 0x33f   : > { %v400_v24 = vpop.permute.xlu0 %399 }
 0x340   : > { %427 = vmatpush.msrb.mxu1 %v400_v24 }
 0x351   : > { %305 = vmax.xlane.f32.xlu0 %v304_v29  ;;  %636 = vrot.lane.b32.xlu2 %v577_v27, %s1237_s6 }
 0x352   : > { %541 = vrot.lane.b32.xlu1 %v536_v28, %s1237_s6 }
 0x35a   : > { %328 = vrot.lane.b32.xlu1 %v1336_v35, %s1237_s6 }
 0x394   : > { %v383_v33 = vpop.xlane.xlu1 %382 }
 0x395   : > { %1107 = vrcp.f32 %v383_v33 }
 0x399   : > { %v540_v47 = vpop.permute.xlu0 %539 }
 0x39b   : > { %v1108_v37 = vpop.eup %1107 }
 0x39c   : > { %v386_v38 = vpop.xlane.xlu2 %385  ;;  %v389_v39 = vmul.f32 %v1108_v37, %v1102_v4 }
 0x39d   : > { %1109 = vrcp.f32 %v386_v38 }
 0x39e   : > { %1006 = vmatmul.msk.f32.vlgmr.msrb.gmra.mxu1 %vm303_vm5, %v389_v39 }
 0x3a3   : > { %v1110_v32 = vpop.eup %1109 }
 0x3a4   : > { %v310_v40 = vpop.xlane.xlu2 %309  ;;  %v390_v41 = vmul.f32 %v1110_v32, %v1104_v10 }
 0x3a5   : > { %v312_v42 = vsub.f32 %v302_v15, %v310_v40 }
 0x3a6   : > { %1007 = vmatmul.msk.f32.gmra.mxu1 %vm303_vm5, %v390_v41 }
 0x3a7   : > { %v315_v43 = vmul.f32 1.442695, %v312_v42 }
 0x3a9   : > { %1111 = vpow2.f32 %v315_v43 }
 0x3ac   : > { %v526_v46 = vpop.xlane.xlu1 %525  ;;  %v511_v8 = vpop.xlane.xlu2 %510 }
 0x3ad   : > { %1113 = vrcp.f32 %v526_v46  ;;  %v515_v11 = vsub.f32 %v1386_v20, %v511_v8  ;;  %v683_v46 = vld [vmem:[#allocation2 + $0x80] sm:$0xff]  ;;  %v719_v8 = vld [vmem:[#allocation2 + $0xb0] sm:$0xff] }
 0x3af   : > { %v1401_v44 = vpop.eup %1111  ;;  %v517_v12 = vmul.f32 1.442695, %v515_v11  ;;  %v717_v11 = vld [vmem:[#allocation2 + $0xa0] sm:$0xff] }
 0x3b0   : > { %v320_v35 = vsel %vm307_vm6, %v1401_v44, 0.0 }
 0x3b1   : > { %321 = vadd.xlane.f32.xlu2 %v320_v35  ;;  %v684_v35 = vld [vmem:[#allocation2 + $0x88] sm:$0xff] }
 0x3b2   : > { %705 = vmatpush.msra.mxu3 %v684_v35 }
 0x3b3   : > { %v1114_v48 = vpop.eup %1113 }
 0x3b4   : > { %v530_v53 = vmul.f32 %v1114_v48, %v1106_v21  ;;  %v637_v9 = vpop.permute.xlu2 %636  ;;  %706 = vmatpush.msra.mxu3 %v683_v46  ;;  %v681_v48 = vld [vmem:[#allocation2 + $0x70] sm:$0xff] }
 0x3b5   : > { %v640_v10 = vmul.f32 %v637_v9, %v1319_v30  ;;  %v639_v25 = vmul.f32 %v637_v9, %v1322_v31  ;;  %v828_v9 = vld [vmem:[#allocation2 + $0x128] sm:$0xff] }
 0x3c4   : > { %v542_v49 = vpop.permute.xlu1 %541  ;;  %v306_v51 = vpop.xlane.xlu0 %305 }
 0x3c5   : > { %v311_v52 = vsub.f32 %v301_v26, %v306_v51  ;;  %1015 = vmatpush.msk.msrb.mxu0 %vm191_vm0, %v542_v49  ;;  %1038 = vmatpush.msk.msra.mxu1 %vm191_vm0, %v542_v49  ;;  %v723_v49 = vld [vmem:[#allocation2 + $0xd0] sm:$0xff] }
 0x3c6   : > { %v773_v51 = vld [vmem:[#allocation2 + $0xf0] sm:$0xff] }
 0x3c7   : > { %v313_v54 = vmul.f32 1.442695, %v311_v52  ;;  %567 = vmatpush.msrb.mxu0 %v540_v47  ;;  %1039 = vmatpush.msra.mxu1 %v540_v47  ;;  %v682_v47 = vld [vmem:[#allocation2 + $0x78] sm:$0xff]  ;;  %v801_v52 = vld [vmem:[#allocation2 + $0x110] sm:$0xff] }
 0x3c8   : > { %1017 = vmatmul.msk.f32.vlgmr.msra.gmra.mxu1 %vm303_vm5, %v530_v53  ;;  %707 = vmatpush.msra.mxu3 %v682_v47 }
 0x3c9   : > { %1115 = vpow2.f32 %v313_v54  ;;  %1018 = vmatpush.xpose.msk.msrb.mxu1 %vm224_vm4, %v1329_v34  ;;  %740 = vmatpush.msra.mxu0 %v723_v49 }
 0x3ca   : > { %1117 = vpow2.f32 %v517_v12  ;;  %708 = vmatpush.msra.mxu3 %v681_v48  ;;  %v826_v12 = vld [vmem:[#allocation2 + $0x118] sm:$0xff] }
 0x3cc   : > { %v329_v59 = vpop.permute.xlu1 %328 }
 0x3cd   : > { %1019 = vmatpush.xpose.msk.msrb.mxu1 %vm224_vm4, %v1338_v36  ;;  %v332_v60 = vmul.f32 %v329_v59, %v1319_v30 }
 0x3cf   : > { %v1116_v56 = vpop.eup %1115 }
 0x3d0   : > { %1020 = vmatmul.msk.f32.vlgmr.msrb.gmra.mxu1 %vm224_vm4, %v578_v55  ;;  %v317_v57 = vsel %vm303_vm5, %v1116_v56, 0.0  ;;  %v1118_v13 = vpop.eup %1117 }
 0x3d1   : > { %318 = vadd.xlane.f32.xlu0 %v317_v57  ;;  %789 = vmatpush.msra.mxu1 %v773_v51 }
 0x3d8   : > { %1021 = vmatmul.msk.f32.gmra.mxu1 %vm224_vm4, %v579_v58 }
 0x3e5   : > { %439 = vrot.lane.b32.xlu0 %v332_v60, %s1237_s6 }
 0x41b   : > { %v1419_v34 = vpop.f32.mrf.mxu1 }
 0x423   : > { %v1421_v36 = vpop.f32.mrf.mxu1 }
 0x424   : > { %v322_v14 = vpop.xlane.xlu2 %321 }
 0x444   : > { %v319_v0 = vpop.xlane.xlu0 %318 }
 0x445   : > { %v1423_v61 = vpop.f32.mrf.mxu1 }
 0x44d   : > { %v603_v62 = vpop.f32.mrf.mxu1 }
 0x44e   : > { %v609_v63 = vmul.f32 0.35355338, %v603_v62 }
 0x450   : > { %v611_v1 = vadd.f32 %v609_v63, %v1363_v45  ;;  %v331_v45 = vmul.f32 %v329_v59, %v1322_v31 }
 0x452   : > { %v613_v2 = vsel %vm303_vm5, %v611_v1, -inf }
 0x453   : > { %614 = vmax.xlane.f32.xlu2 %v613_v2  ;;  %v772_v2 = vld [vmem:[#allocation2 + $0xe8] sm:$0xff] }
 0x454   : > { %790 = vmatpush.msra.mxu1 %v772_v2 }
 0x455   : > { %v606_v3 = vpop.f32.mrf.mxu1 }
 0x456   : > { %v610_v4 = vmul.f32 0.35355338, %v606_v3  ;;  %v800_v3 = vld [vmem:[#allocation2 + $0x108] sm:$0xff] }
 0x457   : > { %v440_v5 = vpop.permute.xlu0 %439 }
 0x458   : > { %1008 = vmatpush.msk.msrb.mxu2 %vm191_vm0, %v440_v5  ;;  %v612_v6 = vadd.f32 %v610_v4, %v1367_v50  ;;  %v521_v50 = vsel %vm303_vm5, %v1118_v13, 0.0  ;;  %v771_v4 = vld [vmem:[#allocation2 + $0xe0] sm:$0xff] }
 0x459   : > { %v799_v5 = vld [vmem:[#allocation2 + $0x100] sm:$0xff]  ;;  %791 = vmatpush.msra.mxu1 %v771_v4 }
 0x45a   : > { %v616_v7 = vsel %vm307_vm6, %v612_v6, -inf }
 0x45b   : > { %617 = vmax.xlane.f32.xlu1 %v616_v7  ;;  %v798_v7 = vld [vmem:[#allocation2 + $0xf8] sm:$0xff] }
 0x46b   : > { %645 = vrot.lane.b32.xlu2 %v640_v10, %s1237_s6  ;;  %v718_v10 = vld [vmem:[#allocation2 + $0xa8] sm:$0xff] }
 0x474   : > { %437 = vrot.lane.b32.xlu1 %v331_v45, %s1237_s6  ;;  %v827_v45 = vld [vmem:[#allocation2 + $0x120] sm:$0xff] }
 0x49e   : > { %522 = vadd.xlane.f32.xlu1 %v521_v50  ;;  %v1098_v50 = vld [vmem:[#allocation2 + $0x90] ss:$0 sm:$0xff] }
 0x4c6   : > { %v615_v15 = vpop.xlane.xlu2 %614 }
 0x4c7   : > { %v619_v16 = vsub.f32 %v611_v1, %v615_v15  ;;  %v722_v1 = vld [vmem:[#allocation2 + $0xc8] sm:$0xff] }
 0x4c8   : > { %741 = vmatpush.msra.mxu0 %v722_v1 }
 0x4c9   : > { %v621_v17 = vmul.f32 1.442695, %v619_v16 }
 0x4cb   : > { %1119 = vpow2.f32 %v621_v17 }
 0x4ce   : > { %v618_v30 = vpop.xlane.xlu1 %617  ;;  %v646_v28 = vpop.permute.xlu2 %645 }
 0x4cf   : > { %v620_v18 = vsub.f32 %v612_v6, %v618_v30  ;;  %v770_v6 = vld [vmem:[#allocation2 + $0xd8] sm:$0xff] }
 0x4d0   : > { %792 = vmatpush.msra.mxu1 %v770_v6 }
 0x4d1   : > { %v1120_v19 = vpop.eup %1119  ;;  %v623_v21 = vmul.f32 1.442695, %v620_v18 }
 0x4d2   : > { %v625_v22 = vsel %vm303_vm5, %v1120_v19, 0.0 }
 0x4d3   : > { %1121 = vpow2.f32 %v623_v21  ;;  %626 = vadd.xlane.f32.xlu0 %v625_v22  ;;  %v865_v21 = vld [vmem:[#allocation2 + $0x178] sm:$0xff]  ;;  %v864_v22 = vld [vmem:[#allocation2 + $0x170] sm:$0xff] }
 0x4d4   : > { %1123 = vrcp.f32 %v319_v0 }
 0x4d5   : > { %1125 = vrcp.f32 %v322_v14 }
 0x4d9   : > { %v1122_v20 = vpop.eup %1121 }
 0x4da   : > { %v628_v23 = vsel %vm307_vm6, %v1122_v20, 0.0  ;;  %v1124_v24 = vpop.eup %1123 }
 0x4db   : > { %629 = vadd.xlane.f32.xlu2 %v628_v23  ;;  %v325_v27 = vmul.f32 %v1124_v24, %v1116_v56  ;;  %v1126_v29 = vpop.eup %1125  ;;  %v862_v23 = vld [vmem:[#allocation2 + $0x160] sm:$0xff]  ;;  %v861_v24 = vld [vmem:[#allocation2 + $0x158] sm:$0xff] }
 0x4dc   : > { %v326_v33 = vmul.f32 %v1126_v29, %v1401_v44 }
 0x4e6   : > { %v438_v26 = vpop.permute.xlu1 %437 }
 0x4e7   : > { %465 = vmatpush.msrb.mxu2 %v438_v26  ;;  %643 = vrot.lane.b32.xlu0 %v639_v25, %s1237_s6  ;;  %v860_v25 = vld [vmem:[#allocation2 + $0x150] sm:$0xff]  ;;  %v859_v26 = vld [vmem:[#allocation2 + $0x148] sm:$0xff] }
 0x4e8   : > { %1009 = vmatmul.msk.f32.vlgmr.msrb.gmra.mxu2 %vm303_vm5, %v325_v27  ;;  %v858_v27 = vld [vmem:[#allocation2 + $0x140] sm:$0xff] }
 0x4e9   : > { %1022 = vmatpush.msk.msra.mxu2 %vm191_vm0, %v646_v28 }
 0x4f0   : > { %1010 = vmatmul.msk.f32.gmra.mxu2 %vm303_vm5, %v326_v33 }
 0x511   : > { %v523_v37 = vpop.xlane.xlu1 %522 }
 0x512   : > { %1127 = vrcp.f32 %v523_v37 }
 0x518   : > { %v1128_v38 = vpop.eup %1127 }
 0x519   : > { %v529_v31 = vmul.f32 %v1128_v38, %v1118_v13  ;;  %v716_v13 = vld [vmem:[#allocation2 + $0x98] sm:$0xff] }
 0x51b   : > { %1016 = vmatmul.msk.f32.vlgmr.msrb.gmra.mxu0 %vm303_vm5, %v529_v31 }
 0x546   : > { %v627_v39 = vpop.xlane.xlu0 %626 }
 0x547   : > { %1129 = vrcp.f32 %v627_v39 }
 0x54d   : > { %v1130_v40 = vpop.eup %1129 }
 0x54e   : > { %v630_v32 = vpop.xlane.xlu2 %629  ;;  %v633_v41 = vmul.f32 %v1130_v40, %v1120_v19 }
 0x54f   : > { %1131 = vrcp.f32 %v630_v32  ;;  %v1099_v32 = vld [vmem:[#allocation2 + $0x138] ss:$0 sm:$0xff] }
 0x555   : > { %v1132_v43 = vpop.eup %1131 }
 0x556   : > { %v634_v44 = vmul.f32 %v1132_v43, %v1122_v20  ;;  %v863_v20 = vld [vmem:[#allocation2 + $0x168] sm:$0xff] }
 0x559   : > { %v644_v42 = vpop.permute.xlu0 %643 }
 0x55a   : > { %671 = vmatpush.msra.mxu2 %v644_v42 }
 0x55b   : > { %1023 = vmatmul.msk.f32.vlgmr.msra.gmra.mxu2 %vm303_vm5, %v633_v41 }
 0x55c   : > { %817 = vmatpush.msrb.mxu2 %v801_v52 }
 0x55e   : > { %818 = vmatpush.msrb.mxu2 %v800_v3 }
 0x560   : > { %819 = vmatpush.msrb.mxu2 %v799_v5 }
 0x562   : > { %820 = vmatpush.msrb.mxu2 %v798_v7 }
 0x563   : > { %1024 = vmatmul.msk.f32.gmra.mxu2 %vm303_vm5, %v634_v44  ;;  %v1100_v44 = vld [vmem:[#allocation2 + $0x180] ss:$0 sm:$0xff] }
 0x56b   : > { %v467_v53 = vpop.f32.mrf.mxu2 }
 0x56c   : > { %v468_v56 = vadd.f32 %v467_v53, %v1419_v34  ;;  %v721_v34 = vld [vmem:[#allocation2 + $0xc0] sm:$0xff] }
 0x56d   : > { %742 = vmatpush.msra.mxu0 %v721_v34 }
 0x573   : > { %v470_v54 = vpop.f32.mrf.mxu2 }
 0x574   : > { %v471_v60 = vadd.f32 %v470_v54, %v1421_v36  ;;  %v720_v36 = vld [vmem:[#allocation2 + $0xb8] sm:$0xff] }
 0x575   : > { %743 = vmatpush.msra.mxu0 %v720_v36 }
 0x576   : > { %v576_v62 = vadd.f32 %v1423_v61, %v471_v60  ;;  %v829_v61 = vld [vmem:[#allocation2 + $0x130] sm:$0xff] }
 0x577   : > { %845 = vmatpush.msrb.mxu3 %v829_v61  ;;  %762 = vmatpush.msrb.mxu0 %v719_v8 }
 0x579   : > { %846 = vmatpush.msrb.mxu3 %v828_v9  ;;  %763 = vmatpush.msrb.mxu0 %v718_v10 }
 0x57b   : > { %847 = vmatpush.msrb.mxu3 %v827_v45  ;;  %764 = vmatpush.msrb.mxu0 %v717_v11 }
 0x57d   : > { %848 = vmatpush.msrb.mxu3 %v826_v12  ;;  %765 = vmatpush.msrb.mxu0 %v716_v13 }
 0x598   : > { %v569_v55 = vpop.f32.mrf.mxu0 }
 0x599   : > { %v575_v57 = vadd.f32 %v569_v55, %v468_v56 }
 0x5de   : > { %v673_v58 = vpop.f32.mrf.mxu2 }
 0x5df   : > { %v679_v59 = vadd.f32 %v673_v58, %v575_v57 }
 0x5e1   : > { %1025 = vmatmul.msk.f32.vlgmr.msra.gmra.mxu3 %vm224_vm4, %v679_v59 }
 0x5e6   : > { %v676_v63 = vpop.f32.mrf.mxu2 }
 0x5e7   : > { %v680_v0 = vadd.f32 %v676_v63, %v576_v62 }
 0x5e9   : > { %1026 = vmatmul.msk.f32.gmra.mxu3 %vm224_vm4, %v680_v0 }
 0x664   : > { %v710_v14 = vpop.f32.mrf.mxu3 }
 0x665   : > { %v711_v15 = vadd.f32 %v1098_v50, %v710_v14 }
 0x667   : > { %v725_v16 = vrot.slane %v711_v15, 2  ;;  %v774_v17 = vrot.slane %v711_v15, 4  ;;  %v802_v30 = vrot.slane %v711_v15, 6 }
 0x669   : > { %1027 = vmatmul.msk.f32.vlgmr.msra.gmra.mxu0 %vm224_vm4, %v725_v16  ;;  %1029 = vmatmul.msk.f32.vlgmr.msra.gmra.mxu1 %vm224_vm4, %v774_v17 }
 0x66a   : > { %1030 = vmatmul.msk.f32.vlgmr.msrb.gmra.mxu2 %vm224_vm4, %v802_v30  ;;  %880 = vmatpush.msra.mxu0 %v865_v21 }
 0x66c   : > { %v713_v18 = vpop.f32.mrf.mxu3  ;;  %881 = vmatpush.msra.mxu0 %v864_v22 }
 0x66d   : > { %v714_v19 = vadd.f32 %v1098_v50, %v713_v18 }
 0x66e   : > { %882 = vmatpush.msra.mxu0 %v863_v20 }
 0x66f   : > { %1031 = vmatmul.msk.f32.vlgmr.msrb.gmra.mxu3 %vm224_vm4, %v714_v19 }
 0x670   : > { %883 = vmatpush.msra.mxu0 %v862_v23 }
 0x671   : > { %1028 = vmatmul.msk.f32.vlgmr.msrb.gmra.mxu0 %vm224_vm4, %v711_v15 }
 0x672   : > { %884 = vmatpush.msra.mxu0 %v861_v24 }
 0x674   : > { %885 = vmatpush.msra.mxu0 %v860_v25 }
 0x676   : > { %886 = vmatpush.msra.mxu0 %v859_v26 }
 0x678   : > { %887 = vmatpush.msra.mxu0 %v858_v27 }
 0x6e6   : > { %v745_v28 = vpop.f32.mrf.mxu0  ;;  %v794_v37 = vpop.f32.mrf.mxu1 }
 0x6ed   : > { %v822_v31 = vpop.f32.mrf.mxu2 }
 0x6ee   : > { %v767_v29 = vpop.f32.mrf.mxu0 }
 0x6ef   : > { %v768_v33 = vadd.f32 %v767_v29, %v745_v28 }
 0x6f1   : > { %v797_v38 = vadd.f32 %v794_v37, %v768_v33 }
 0x6f2   : > { %v850_v40 = vpop.f32.mrf.mxu3 }
 0x6f3   : > { %v825_v39 = vadd.f32 %v822_v31, %v797_v38 }
 0x6f5   : > { %v853_v41 = vadd.f32 %v850_v40, %v825_v39 }
 0x6f7   : > { %v856_v42 = vadd.f32 %v1099_v32, %v853_v41 }
 0x6f9   : > { %v857_v43 = vmax.f32 %v856_v42, 0.0 }
 0x6fb   : > { %1032 = vmatmul.msk.f32.vlgmr.msra.gmra.mxu0 %vm868_vm7, %v857_v43 }
 0x778   : > { %v889_v35 = vpop.f32.mrf.mxu0 }
 0x779   : > { %v890_v46 = vadd.f32 %v1100_v44, %v889_v35 }
 0x77b   : > { %893 = vst.msk [vmem:[%s153_s22] sm:$0x3] %vm892_vm8, %v890_v46 }
 0x77c   : > { %1190 = shalt.err (!%p1187_p8)
}
 0x77d   : > { %1044 = dma.vmem_to_hbm [thread:$0]  (%p1291_p5), %s908_s23, 32, %s910_s24, %s895_s25  }
 0x77e PF: > { %p1056_p9 = scmp.ge.s32.totalorder %s1229_s12, 2  ;;  %s921_s4 = sand.u32 1, %s1217_s9  }
 0x77f   : > { %s922_s5 = scalar_lea.sflag [#allocation4], %s921_s4 }
 0x780   : > { %p1051_p10 = pnand %p1056_p9, %p1295_p6 }
 0x782   : > { %p1052_p11 = pneg %p1051_p10 }
 0x784   : > { %1212 = dma.done.wait (%p1052_p11), %s922_s5, 32  }
 0x785   : > { %1214 = vsyncadd (%p1052_p11), %s922_s5, 4294967264  ;;  %p13_p12 = scmp.ge.s32.totalorder %s1278_s15, 6   ;;  %s1494_s9 = smov %s1221_s10 }
 0x786   : > { %s1495_s10 = smov %s1225_s11  ;;  %s1496_s11 = smov %s1289_s18 }
 0x787   : > { %s1497_s12 = smov %s1278_s15  ;;  %15 = sbr.rel (!%p13_p12) target bundleno = 4 (0x4), region = 68 }
 0x78c   :  { %928 = vsyncpa [#allocation3], 1 }
 0x78d   :  { %930 = vsyncpa [#allocation3 + $0x1], 1 }
 0x78e   :  { %931 = vsyncpa [#allocation4], 1 }
 0x78f   :  { %933 = vsyncpa [#allocation4 + $0x1], 1 }

</bundles_post_ra>
